<compile_context>
chip_gen: v6e
topology: v6e:2x2x1
jax: 0.10.0
libtpu: 0.0.40
codegen_flags: <defaults>
</compile_context>

<pallas_src>
import functools
import math

import jax
import jax.numpy as jnp
from jax.experimental import pallas as pl
from jax.experimental.pallas import tpu as pltpu

CFG16 = [64, 'M', 128, 128, 'M', 256, 256, 256, 'M',
         512, 512, 512, 'M', 512, 512, 512, 'M']
BN_EPS = 1e-5
_VMEM_LIMIT = 32 * 1024 * 1024


# ----------------------------------------------------------------------------
# Fused Conv3x3(pad=1, stride=1, bias=False) + folded BN + ReLU (+ MaxPool2x2).
# Grid: one image per grid step (parallel axis -> megacore on v7x).
# ----------------------------------------------------------------------------
def _shift_cols(v, kw):
    """Return lhs with lhs[w] = v[w + kw - 1], zero-filled outside [0, W)."""
    if kw == 1:
        return v
    zero_row = jnp.zeros((1, v.shape[1]), v.dtype)
    if kw == 0:
        return jnp.concatenate([zero_row, v[:-1, :]], axis=0)
    return jnp.concatenate([v[1:, :], zero_row], axis=0)


def _conv_bn_relu_kernel(x_ref, w_ref, b_ref, o_ref, *, three_by_three, pool):
    # x_ref: (1, H, W, Cin)   bf16  (Cin==9 im2col taps when three_by_three=False)
    # w_ref: (T, Cin, Cout)   bf16  T == 9 (3x3 taps) or 1 (pre-im2col'ed 1st conv)
    # b_ref: (1, Cout)        f32   folded eval-mode BN bias (zero for default BN)
    # o_ref: (1, Ho, Wo, Cout) bf16 (Ho,Wo) = (H,W), or (H/2,W/2) when pooling
    _, H, W, _ = x_ref.shape
    _, Ho, Wo, Cout = o_ref.shape

    # Hoisted: bias broadcast (JAX does not CSE broadcast_in_dim).
    bias = jnp.broadcast_to(b_ref[...].astype(jnp.float32), (W, Cout))

    if pool:
        # 0/1 selection matrices picking even / odd columns (exact in bf16).
        r_i = jax.lax.broadcasted_iota(jnp.int32, (Wo, W), 0)
        c_i = jax.lax.broadcasted_iota(jnp.int32, (Wo, W), 1)
        p_even = (c_i == 2 * r_i).astype(jnp.bfloat16)
        p_odd = (c_i == 2 * r_i + 1).astype(jnp.bfloat16)

    def conv_row(h):
        """One conv + BN + ReLU output row, f32 (W, Cout)."""
        if three_by_three:
            acc = jnp.zeros((W, Cout), jnp.float32)
            for kh in range(3):
                r = h + kh - 1                                   # halo row index
                row = x_ref[0, jnp.clip(r, 0, H - 1)]            # (W, Cin) bf16
                row = jnp.where(jnp.logical_and(r >= 0, r < H),
                                row, jnp.zeros_like(row))
                for kw in range(3):
                    acc = acc + jnp.dot(_shift_cols(row, kw),
                                        w_ref[3 * kh + kw],
                                        preferred_element_type=jnp.float32)
        else:
            # First conv: K=9 single matmul per row (taps pre-im2col'ed).
            acc = jnp.dot(x_ref[0, h], w_ref[0],
                          preferred_element_type=jnp.float32)
        return jnp.maximum(acc + bias, 0.0)

    if pool:
        def body(i, carry):
            y = jnp.maximum(conv_row(2 * i), conv_row(2 * i + 1))   # pool over H
            y = y.astype(jnp.bfloat16)
            pooled = jnp.maximum(                                   # pool over W
                jnp.dot(p_even, y, preferred_element_type=jnp.float32),
                jnp.dot(p_odd, y, preferred_element_type=jnp.float32))
            o_ref[0, i] = pooled.astype(o_ref.dtype)
            return carry
    else:
        def body(h, carry):
            o_ref[0, h] = conv_row(h).astype(o_ref.dtype)
            return carry

    jax.lax.fori_loop(0, Ho, body, 0)


def conv_bn_relu(x, w, b, *, pool):
    N, H, W, Cin = x.shape
    T, _, Cout = w.shape
    Ho, Wo = (H // 2, W // 2) if pool else (H, W)
    kernel = functools.partial(_conv_bn_relu_kernel,
                               three_by_three=(T == 9), pool=pool)
    return pl.pallas_call(
        kernel,
        out_shape=jax.ShapeDtypeStruct((N, Ho, Wo, Cout), jnp.bfloat16),
        grid=(N,),
        in_specs=[
            pl.BlockSpec((1, H, W, Cin), lambda n: (n, 0, 0, 0)),
            pl.BlockSpec((T, Cin, Cout), lambda n: (0, 0, 0)),
            pl.BlockSpec((1, Cout), lambda n: (0, 0)),
        ],
        out_specs=pl.BlockSpec((1, Ho, Wo, Cout), lambda n: (n, 0, 0, 0)),
        compiler_params=pltpu.CompilerParams(
            dimension_semantics=("parallel",),
            vmem_limit_bytes=_VMEM_LIMIT),
    )(x, w, b)


# ----------------------------------------------------------------------------
# Linear (+ optional ReLU), bf16 weights, f32 accumulation, tiled over columns.
# ----------------------------------------------------------------------------
def _linear_kernel(x_ref, w_ref, b_ref, o_ref, *, apply_relu):
    y = jnp.dot(x_ref[...].astype(jnp.bfloat16), w_ref[...],
                preferred_element_type=jnp.float32)
    y = y + b_ref[...]
    if apply_relu:
        y = jnp.maximum(y, 0.0)
    o_ref[...] = y


def linear(x, w, b, *, relu, tn=1024):
    B, K = x.shape
    _, Nf = w.shape
    tn = min(tn, Nf)
    if Nf % tn != 0:
        tn = Nf
    b2 = b.reshape(1, Nf).astype(jnp.float32)
    return pl.pallas_call(
        functools.partial(_linear_kernel, apply_relu=relu),
        out_shape=jax.ShapeDtypeStruct((B, Nf), jnp.float32),
        grid=(Nf // tn,),
        in_specs=[
            pl.BlockSpec((B, K), lambda j: (0, 0)),
            pl.BlockSpec((K, tn), lambda j: (0, j)),
            pl.BlockSpec((1, tn), lambda j: (0, j)),
        ],
        out_specs=pl.BlockSpec((B, tn), lambda j: (0, j)),
        compiler_params=pltpu.CompilerParams(
            dimension_semantics=("parallel",),
            vmem_limit_bytes=_VMEM_LIMIT),
    )(x, w, b2)


# ----------------------------------------------------------------------------
# Parameter init (deterministic, matches the PyTorch module's init scheme).
# ----------------------------------------------------------------------------
def init_params(key, num_classes):
    convs = []
    in_c = 1
    i = 0
    while i < len(CFG16):
        out_c = CFG16[i]
        pool = (i + 1 < len(CFG16)) and CFG16[i + 1] == 'M'
        key, wk = jax.random.split(key)
        # nn.init.kaiming_normal_(mode='fan_out', nonlinearity='relu')
        std = math.sqrt(2.0 / (out_c * 9))
        w = jax.random.normal(wk, (3, 3, in_c, out_c), jnp.float32) * std
        # Fold eval-mode BN (gamma=1, beta=0, mean=0, var=1) into the weights.
        w = w * (1.0 / math.sqrt(1.0 + BN_EPS))
        bias = jnp.zeros((1, out_c), jnp.float32)          # beta - mean*scale = 0
        if in_c == 1:
            w_k = w.reshape(9, out_c)[None, :, :]          # (1, 9, Cout) im2col'ed
        else:
            w_k = w.reshape(9, in_c, out_c)                # (9, Cin, Cout)
        convs.append(dict(w=w_k.astype(jnp.bfloat16), b=bias, pool=pool))
        in_c = out_c
        i += 2 if pool else 1

    key, k1, k2, k3, kb2, kb3 = jax.random.split(key, 6)
    # nn.init.normal_(weight, 0, 0.01); biases keep PyTorch Linear defaults.
    fc1_w = jax.random.normal(k1, (512 * 2 * 2, 4096), jnp.float32) * 0.01
    fc1_b = jnp.zeros((4096,), jnp.float32)                       # bias=False
    fc2_w = jax.random.normal(k2, (4096, 4096), jnp.float32) * 0.01
    fc2_b = jax.random.uniform(kb2, (4096,), jnp.float32, -1.0 / 64.0, 1.0 / 64.0)
    fc3_w = jax.random.normal(k3, (4096, num_classes), jnp.float32) * 0.01
    fc3_b = jax.random.uniform(kb3, (num_classes,), jnp.float32,
                               -1.0 / 64.0, 1.0 / 64.0)
    fc = [(fc1_w.astype(jnp.bfloat16), fc1_b, True),
          (fc2_w.astype(jnp.bfloat16), fc2_b, True),
          (fc3_w.astype(jnp.bfloat16), fc3_b, False)]
    return dict(features=convs, fc=fc)


# ----------------------------------------------------------------------------
# Forward pass (mirrors VGG_celeba.forward).
# ----------------------------------------------------------------------------
def _im2col_3x3_single_channel(x_nhw):
    # (N, H, W) -> (N, H, W, 9), taps in kh*3+kw order, zero-padded halo.
    _, H, W = x_nhw.shape
    xp = jnp.pad(x_nhw, ((0, 0), (1, 1), (1, 1)))
    taps = [xp[:, kh:kh + H, kw:kw + W] for kh in range(3) for kw in range(3)]
    return jnp.stack(taps, axis=-1)


def vgg_celeba_forward(x_nchw, params):
    # PyTorch conv input is NCHW -> kernels use NHWC (channels on the lane dim).
    x = jnp.transpose(x_nchw, (0, 2, 3, 1)).astype(jnp.bfloat16)
    # First conv has Cin=1: build the K=9 im2col taps on the host (tiny input).
    x = _im2col_3x3_single_channel(x[..., 0])              # (N, H, W, 9)
    for layer in params['features']:
        x = conv_bn_relu(x, layer['w'], layer['b'], pool=layer['pool'])
    # out.view(N, -1) flattens in (C, H, W) order -> transpose back first.
    feat = jnp.transpose(x, (0, 3, 1, 2)).reshape(x.shape[0], -1)
    out = feat
    for w, b, relu in params['fc']:
        out = linear(out, w, b, relu=relu)
    return out


if __name__ == "__main__":
    key = jax.random.PRNGKey(0)
    kp, kx = jax.random.split(key)
    num_classes = 2          # CelebA binary attribute head
    params = init_params(kp, num_classes)

    # Input shape implied by the classifier (512*2*2 after 5 maxpools):
    # NCHW = (batch=2, channels=1, 64, 64).
    x = jax.random.normal(kx, (2, 1, 64, 64), jnp.float32)

    out = vgg_celeba_forward(x, params)
    out = jax.block_until_ready(out)
    assert out.shape == (2, num_classes)
    assert bool(jnp.all(jnp.isfinite(out)))
    print("KERNEL_OK")
</pallas_src>

<mosaic_0001>
module attributes {stable_mosaic.version = 11 : i64} {
  func.func @_conv_bn_relu_kernel(%arg0: i32, %arg1: memref<1x64x64x9xbf16, #tpu.memory_space<vmem>>, %arg2: memref<1x9x64xbf16, #tpu.memory_space<vmem>>, %arg3: memref<1x64xf32, #tpu.memory_space<vmem>>, %arg4: memref<1x32x32x64xbf16, #tpu.memory_space<vmem>>) attributes {dimension_semantics = [#tpu.dimension_semantics<parallel>], iteration_bounds = array<i64: 2>, scalar_prefetch = 0 : i64, scratch_operands = 0 : i64, tpu.core_type = #tpu.core_type<tc>, window_params = [{transform_indices = @transform_0, window_bounds = array<i64: 1, 64, 64, 9>}, {pipeline_mode = #tpu.pipeline_mode<synchronous>, transform_indices = @transform_1, window_bounds = array<i64: 1, 9, 64>}, {pipeline_mode = #tpu.pipeline_mode<synchronous>, transform_indices = @transform_2, window_bounds = array<i64: 1, 64>}, {transform_indices = @transform_3, window_bounds = array<i64: 1, 32, 32, 64>}]} {
    %c0 = arith.constant 0 : index
    %c0_0 = arith.constant 0 : index
    %0 = vector.load %arg3[%c0, %c0_0] : memref<1x64xf32, #tpu.memory_space<vmem>>, vector<1x64xf32>
    %1 = vector.shape_cast %0 : vector<1x64xf32> to vector<1x64xf32>
    %2 = vector.broadcast %1 : vector<1x64xf32> to vector<64x64xf32>
    %3 = tpu.iota {dimensions = array<i32: 0>} : vector<32x64xi32>
    %4 = tpu.iota {dimensions = array<i32: 1>} : vector<32x64xi32>
    %c2_i32 = arith.constant 2 : i32
    %5 = vector.broadcast %c2_i32 : i32 to vector<32x64xi32>
    %6 = arith.muli %5, %3 : vector<32x64xi32>
    %7 = arith.cmpi eq, %4, %6 : vector<32x64xi32>
    %8 = arith.extui %7 : vector<32x64xi1> to vector<32x64xi32>
    %9 = arith.sitofp %8 : vector<32x64xi32> to vector<32x64xf32>
    %10 = arith.truncf %9 : vector<32x64xf32> to vector<32x64xbf16>
    %c2_i32_1 = arith.constant 2 : i32
    %11 = vector.broadcast %c2_i32_1 : i32 to vector<32x64xi32>
    %12 = arith.muli %11, %3 : vector<32x64xi32>
    %c1_i32 = arith.constant 1 : i32
    %13 = vector.broadcast %c1_i32 : i32 to vector<32x64xi32>
    %14 = arith.addi %12, %13 : vector<32x64xi32>
    %15 = arith.cmpi eq, %4, %14 : vector<32x64xi32>
    %16 = arith.extui %15 : vector<32x64xi1> to vector<32x64xi32>
    %17 = arith.sitofp %16 : vector<32x64xi32> to vector<32x64xf32>
    %18 = arith.truncf %17 : vector<32x64xf32> to vector<32x64xbf16>
    %c0_i32 = arith.constant 0 : i32
    %c32_i32 = arith.constant 32 : i32
    %19 = arith.addi %c0_i32, %c32_i32 : i32
    %c1_i32_2 = arith.constant 1 : i32
    scf.for %arg5 = %c0_i32 to %19 step %c1_i32_2  : i32 {
      %c2_i32_4 = arith.constant 2 : i32
      %20 = arith.muli %c2_i32_4, %arg5 : i32
      %c0_5 = arith.constant 0 : index
      %21 = arith.index_cast %20 : i32 to index
      %c0_6 = arith.constant 0 : index
      %c0_7 = arith.constant 0 : index
      %22 = vector.load %arg1[%c0_5, %21, %c0_6, %c0_7] : memref<1x64x64x9xbf16, #tpu.memory_space<vmem>>, vector<1x1x64x9xbf16>
      %23 = vector.shape_cast %22 : vector<1x1x64x9xbf16> to vector<64x9xbf16>
      %c0_8 = arith.constant 0 : index
      %c0_9 = arith.constant 0 : index
      %c0_10 = arith.constant 0 : index
      %24 = vector.load %arg2[%c0_8, %c0_9, %c0_10] : memref<1x9x64xbf16, #tpu.memory_space<vmem>>, vector<1x9x64xbf16>
      %25 = vector.shape_cast %24 : vector<1x9x64xbf16> to vector<9x64xbf16>
      %cst = arith.constant dense<0.000000e+00> : vector<64x64xf32>
      %26 = tpu.matmul %23, %25, %cst {dimension_numbers = #tpu.dot_dimension_numbers<[1], [0], [0], [1], [0, 0, 1, 1], [], []>} : vector<64x9xbf16>, vector<9x64xbf16>, vector<64x64xf32> -> vector<64x64xf32>
      %27 = arith.addf %26, %2 : vector<64x64xf32>
      %cst_11 = arith.constant 0.000000e+00 : f32
      %28 = vector.broadcast %cst_11 : f32 to vector<64x64xf32>
      %29 = arith.maximumf %27, %28 : vector<64x64xf32>
      %c2_i32_12 = arith.constant 2 : i32
      %30 = arith.muli %c2_i32_12, %arg5 : i32
      %c1_i32_13 = arith.constant 1 : i32
      %31 = arith.addi %30, %c1_i32_13 : i32
      %c0_14 = arith.constant 0 : index
      %32 = arith.index_cast %31 : i32 to index
      %c0_15 = arith.constant 0 : index
      %c0_16 = arith.constant 0 : index
      %33 = vector.load %arg1[%c0_14, %32, %c0_15, %c0_16] : memref<1x64x64x9xbf16, #tpu.memory_space<vmem>>, vector<1x1x64x9xbf16>
      %34 = vector.shape_cast %33 : vector<1x1x64x9xbf16> to vector<64x9xbf16>
      %c0_17 = arith.constant 0 : index
      %c0_18 = arith.constant 0 : index
      %c0_19 = arith.constant 0 : index
      %35 = vector.load %arg2[%c0_17, %c0_18, %c0_19] : memref<1x9x64xbf16, #tpu.memory_space<vmem>>, vector<1x9x64xbf16>
      %36 = vector.shape_cast %35 : vector<1x9x64xbf16> to vector<9x64xbf16>
      %cst_20 = arith.constant dense<0.000000e+00> : vector<64x64xf32>
      %37 = tpu.matmul %34, %36, %cst_20 {dimension_numbers = #tpu.dot_dimension_numbers<[1], [0], [0], [1], [0, 0, 1, 1], [], []>} : vector<64x9xbf16>, vector<9x64xbf16>, vector<64x64xf32> -> vector<64x64xf32>
      %38 = arith.addf %37, %2 : vector<64x64xf32>
      %cst_21 = arith.constant 0.000000e+00 : f32
      %39 = vector.broadcast %cst_21 : f32 to vector<64x64xf32>
      %40 = arith.maximumf %38, %39 : vector<64x64xf32>
      %41 = arith.maximumf %29, %40 : vector<64x64xf32>
      %42 = arith.truncf %41 : vector<64x64xf32> to vector<64x64xbf16>
      %cst_22 = arith.constant dense<0.000000e+00> : vector<32x64xf32>
      %43 = tpu.matmul %10, %42, %cst_22 {dimension_numbers = #tpu.dot_dimension_numbers<[1], [0], [0], [1], [0, 0, 1, 1], [], []>} : vector<32x64xbf16>, vector<64x64xbf16>, vector<32x64xf32> -> vector<32x64xf32>
      %cst_23 = arith.constant dense<0.000000e+00> : vector<32x64xf32>
      %44 = tpu.matmul %18, %42, %cst_23 {dimension_numbers = #tpu.dot_dimension_numbers<[1], [0], [0], [1], [0, 0, 1, 1], [], []>} : vector<32x64xbf16>, vector<64x64xbf16>, vector<32x64xf32> -> vector<32x64xf32>
      %45 = arith.maximumf %43, %44 : vector<32x64xf32>
      %46 = arith.truncf %45 : vector<32x64xf32> to vector<32x64xbf16>
      %c0_24 = arith.constant 0 : index
      %47 = arith.index_cast %arg5 : i32 to index
      %c0_25 = arith.constant 0 : index
      %c0_26 = arith.constant 0 : index
      %48 = vector.load %arg4[%c0_24, %47, %c0_25, %c0_26] : memref<1x32x32x64xbf16, #tpu.memory_space<vmem>>, vector<1x1x32x64xbf16>
      %49 = vector.shape_cast %48 : vector<1x1x32x64xbf16> to vector<32x64xbf16>
      %50 = vector.shape_cast %46 : vector<32x64xbf16> to vector<1x1x32x64xbf16>
      tpu.vector_store %arg4[%c0_24, %47, %c0_25, %c0_26], %50 {strides = array<i32>} : memref<1x32x32x64xbf16, #tpu.memory_space<vmem>>, vector<1x1x32x64xbf16>,
    }
    %c32_i32_3 = arith.constant 32 : i32
    return
  }
  func.func @transform_0(%arg0: i32) -> (i32, i32, i32, i32) {
    %c0_i32 = arith.constant 0 : i32
    %c0_i32_0 = arith.constant 0 : i32
    %c0_i32_1 = arith.constant 0 : i32
    %c0_i32_2 = arith.constant 0 : i32
    return %arg0, %c0_i32, %c0_i32_0, %c0_i32_1 : i32, i32, i32, i32
  }
  func.func @transform_1(%arg0: i32) -> (i32, i32, i32) {
    %c0_i32 = arith.constant 0 : i32
    %c0_i32_0 = arith.constant 0 : i32
    %c0_i32_1 = arith.constant 0 : i32
    %c0_i32_2 = arith.constant 0 : i32
    return %c0_i32, %c0_i32_0, %c0_i32_1 : i32, i32, i32
  }
  func.func @transform_2(%arg0: i32) -> (i32, i32) {
    %c0_i32 = arith.constant 0 : i32
    %c0_i32_0 = arith.constant 0 : i32
    %c0_i32_1 = arith.constant 0 : i32
    return %c0_i32, %c0_i32_0 : i32, i32
  }
  func.func @transform_3(%arg0: i32) -> (i32, i32, i32, i32) {
    %c0_i32 = arith.constant 0 : i32
    %c0_i32_0 = arith.constant 0 : i32
    %c0_i32_1 = arith.constant 0 : i32
    %c0_i32_2 = arith.constant 0 : i32
    return %arg0, %c0_i32, %c0_i32_0, %c0_i32_1 : i32, i32, i32, i32
  }
}

</mosaic_0001>

<bundles_post_ra>
// kernel: tpu_custom_call.1
= control target key start
LH: loop header
LB: loop body
LE: loop exit
PB: predicated region body
PF: predicated region fallthrough
CT: control target
= control target key end

     0   :  { %8 = vsyncpa [#allocation3], 0  ;;  %s1209_s0 = inlined_call_operand.vmem [shape: bf16[2,64,64,9], index: 0, kind: input, shape index: {}]   ;;  %s1210_s1 = inlined_call_operand.vmem [shape: bf16[1,9,64], index: 1, kind: input, shape index: {}]   ;;  %s1211_s2 = inlined_call_operand.vmem [shape: f32[1,64], index: 2, kind: input, shape index: {}]   ;;  %s1212_s3 = inlined_call_operand.hbm [shape: bf16[2,32,32,64], index: 3, kind: output, shape index: {}]  }
   0x1   :  { %10 = vsyncpa [#allocation3 + $0x1], 0  ;;  %s1007_s12 = smov 0   ;;  %s1009_s13 = smov 0  }
   0x2   :  { %s1011_s14 = smov 0   ;;  %s1013_s15 = smov 0  }
   0x3 LB: > { %s1028_s16 = sadd.s32 4294967295, %s976_s15   ;;  %s715_s17 = sadd.s32 4294967294, %s976_s15   ;;  %s976_s15 = sphi %s1013_s15, %s1218_s15   ;;  %s972_s14 = sphi %s1011_s14, %s1217_s14   ;;  %s968_s13 = sphi %s1009_s13, %s1216_s13   ;;  %s964_s12 = sphi %s1007_s12, %s1215_s12  }
   0x4   : > { %s1032_s18 = sadd.s32 1, %s976_s15   ;;  %s91_s19 = sadd.s32 1, %s972_s14 }
   0x5   : > { %s88_s20 = ssub.s32 %s976_s15, %s1032_s18  ;;  %p101_p0 = scmp.ne.s32.totalorder %s972_s14, %s968_s13 }
   0x6   : > { %p89_p1 = scmp.eq.s32.totalorder %s88_s20, 0  ;;  %p102_p2 = scmp.eq.s32.totalorder %s1028_s16, 1 }
   0x7   : > { %p107_p3 = scmp.ne.s32.totalorder %s968_s13, %s964_s12  ;;  %p108_p4 = scmp.eq.s32.totalorder %s715_s17, 1 }
   0x8   : > { %s1043_s21 = scalar_select %p89_p1, %s972_s14, %s91_s19  }
   0x9   : > { %p1045_p5 = por %p102_p2, %p101_p0  ;;  %p1049_p6 = por %p108_p4, %p107_p3 }
   0xa   : > { %p718_p7 = scmp.ge.s32.totalorder %s976_s15, 1  ;;  %p140_p8 = scmp.lt.s32.totalorder %s976_s15, 3 }
   0xc   : > { %p141_p9 = pnand %p718_p7, %p140_p8 }
   0xd   : > { %s161_s24 = sand.u32 (!%p141_p9), 1, %s968_s13   ;;  %p164_p10 = scmp.lt.s32.totalorder (!%p141_p9), %s1028_s16, 1 }
   0xe   : > { %144 = sbr.rel (%p141_p9) target bundleno = 488 (0x1e8), region = 32  ;;  %s1064_s27 = sshll.u32 (!%p141_p9), %s161_s24, 9 }
   0xf   : > { %s163_s6 = scalar_lea.vmem (!%p141_p9), [#allocation2], %s1064_s27  ;;  %s1097_s7 = smov (!%p141_p9), 0  }
  0x13   : > { %v1060_v0 = vld [vmem:[%s1211_s2] ss:$0 sm:$0xff]  ;;  %v177_v1 = vlaneseq  ;;  %s165_s28 = scalar_select %p164_p10, %s1028_s16, 1  ;;  %v982_v12 = vmov 0.0  }
  0x15   : > { %v178_v2 = vshrl.u32 %v177_v1, 7  ;;  %v183_v3 = vand.u32 127, %v177_v1  ;;  %s776_s29 = sshll.u32 %s165_s28, 11 }
  0x16   : > { %s1070_s5 = scalar_lea.vmem %s1209_s0, %s776_s29 }
  0x17   : > { %v179_v4 = vadd.s32 8, %v178_v2  ;;  %v180_v5 = vadd.s32 16, %v178_v2  ;;  %v181_v6 = vadd.s32 24, %v178_v2  ;;  %v184_v7 = vmul.u32 2, %v178_v2 }
  0x19   : > { %v185_v8 = vmul.u32 2, %v179_v4  ;;  %v186_v9 = vmul.u32 2, %v180_v5  ;;  %vm188_vm0 = vcmp.eq.s32.totalorder %v183_v3, %v184_v7  ;;  %v202_v10 = vadd.s32 1, %v184_v7 }
  0x1a   : > { %v187_v11 = vmul.u32 2, %v181_v6  ;;  %v1072_v13 = vsel %vm188_vm0, 1.0, %v982_v12 }
  0x1b   : > { %vm189_vm1 = vcmp.eq.s32.totalorder %v183_v3, %v185_v8  ;;  %vm190_vm2 = vcmp.eq.s32.totalorder %v183_v3, %v186_v9  ;;  %v203_v14 = vadd.s32 1, %v185_v8  ;;  %v204_v15 = vadd.s32 1, %v186_v9 }
  0x1c   : > { %vm191_vm3 = vcmp.eq.s32.totalorder %v183_v3, %v187_v11  ;;  %v1074_v16 = vsel %vm189_vm1, 1.0, %v982_v12  ;;  %v1076_v17 = vsel %vm190_vm2, 1.0, %v982_v12  ;;  %v205_v18 = vadd.s32 1, %v187_v11 }
  0x1d   : > { %v1078_v19 = vsel %vm191_vm3, 1.0, %v982_v12  ;;  %v200_v20 = vpack.c.bf16 %v1074_v16, %v1072_v13  ;;  %vm206_vm4 = vcmp.eq.s32.totalorder %v183_v3, %v202_v10  ;;  %vm207_vm5 = vcmp.eq.s32.totalorder %v183_v3, %v203_v14 }
  0x1e   : > { %v201_v21 = vpack.c.bf16 %v1078_v19, %v1076_v17  ;;  %vm208_vm6 = vcmp.eq.s32.totalorder %v183_v3, %v204_v15  ;;  %vm209_vm7 = vcmp.eq.s32.totalorder %v183_v3, %v205_v18  ;;  %v1084_v22 = vsel %vm206_vm4, 1.0, %v982_v12 }
  0x1f   : > { %v1086_v23 = vsel %vm207_vm5, 1.0, %v982_v12  ;;  %v1088_v24 = vsel %vm208_vm6, 1.0, %v982_v12  ;;  %v1090_v25 = vsel %vm209_vm7, 1.0, %v982_v12 }
  0x20   : > { %v218_v26 = vpack.c.bf16 %v1086_v23, %v1084_v22  ;;  %v219_v27 = vpack.c.bf16 %v1090_v25, %v1088_v24 }
  0x21 LB: >> { %v903_v28 = vld [vmem:[%s1210_s1] sm:$0x1f]   ;;  %vm278_vm8 = vcmask 1043456   ;;  %vm279_vm9 = vcmask 1044480   ;;  %v983_v29 = vmov 65535   ;;  %s778_s10 = sshll.u32 %s980_s7, 6  ;;  %s980_s7 = sphi %s1097_s7, %s225_s7  }
  0x22   : >> { %v280_v30 = vsel %vm278_vm8, 4294967295, %v983_v29  ;;  %s229_s11 = scalar_lea.vmem %s1070_s5, %s778_s10  ;;  %vm265_vm10 = vcmask 72704   ;;  %vm487_vm11 = vcmask 523264   ;;  %s784_s17 = sshll.u32 %s980_s7, 4  ;;  %vm621_vm12 = vcmask 519168  }
  0x23   : >> { %v281_v31 = vsel %vm279_vm9, %v280_v30, 0  ;;  %v904_v33 = vld [vmem:[%s229_s11] sm:$0xff]   ;;  %v906_v35 = vld [vmem:[%s229_s11 + $0x8] sm:$0xff]   ;;  %v908_v37 = vld [vmem:[%s229_s11 + $0x10] sm:$0xff]   ;;  %s620_s19 = scalar_lea.vmem %s163_s6, %s784_s17 [#allocation2]  ;;  %s225_s7 = sadd.s32 1, %s980_s7  }
  0x24   : >> { %v283_v32 = vand.u32 %v903_v28, %v281_v31  ;;  %v905_v34 = vld [vmem:[%s229_s11 + $0x20] sm:$0xff]   ;;  %v907_v36 = vld [vmem:[%s229_s11 + $0x28] sm:$0xff]   ;;  %810 = vmatprep.mubr.msk.bf16.mxu0 %vm265_vm10, %v904_v33  ;;  %v909_v38 = vld [vmem:[%s229_s11 + $0x30] sm:$0xff]   ;;  %p222_p11 = scmp.ge.s32.totalorder %s225_s7, 32  }
  0x25   : >> { %820 = vmatprep.mubr.msk.bf16.mxu1 %vm265_vm10, %v905_v34  ;;  %v910_v39 = vld [vmem:[%s229_s11 + $0x18] sm:$0xff]   ;;  %s785_s20 = sshll.u32 (%p222_p11), %s1028_s16, 13  ;;  %s640_s29 = sshll.u32 (%p222_p11), %s163_s6, 4  ;;  %s1165_s29 = int_to_ptr.vmem [resolvable:$true] %s640_s29 }
  0x26   : >> { %808 = vmatprep.subr.bf16.mxu0 %v283_v32  ;;  %818 = vmatprep.subr.bf16.mxu1 %v283_v32  ;;  %v911_v40 = vld [vmem:[%s229_s11 + $0x38] sm:$0xff]   ;;  %s1161_s28 = scalar_lea.hbm (%p222_p11), %s1212_s3, %s785_s20  ;;  %s1169_s30 = scalar_lea.sflag (%p222_p11), [#allocation3], %s161_s24 }
  0x27   : >> { %809 = vmatpush3.bf16.msra.mxu0 %v283_v32  ;;  %819 = vmatpush3.bf16.msra.mxu1 %v283_v32  ;;  %s912_s4 = scalar_lea.vmem (%p222_p11), %s1165_s29, 8192  ;;  %s984_s16 = smov (%p222_p11), [#allocation2]  }
  0x28   : > { %p913_p12 = scmp.ne.s32.totalorder (%p222_p11), %s1165_s29, %s912_s4  ;;  %s916_s5 = sshll.u32 (%p222_p11), %s984_s16, 4  ;;  %s917_s5 = int_to_ptr.vmem [resolvable:$false] %s916_s5 }
  0x29   : > { %s918_s7 = scalar_lea.vmem (%p222_p11), %s917_s5, 16384  ;;  %p919_p1 = scmp.lt.s32.totalorder (%p222_p11), %s1165_s29, %s917_s5 }
  0x2a   : >> { %811 = vmatmul.mubr.msk.bf16.vlgmr.msra.gmra.mxu0 %vm265_vm10, %v906_v35  ;;  %821 = vmatmul.mubr.msk.bf16.vlgmr.msra.gmra.mxu1 %vm265_vm10, %v907_v36  ;;  %p914_p13 = pnand (%p222_p11), %p913_p12, %p1045_p5  ;;  %p920_p2 = scmp.lt.s32.totalorder (%p222_p11), %s918_s7, %s912_s4 }
  0x2b   : >> { %814 = vmatprep.mubr.msk.bf16.mxu0 %vm265_vm10, %v908_v37  ;;  %824 = vmatprep.mubr.msk.bf16.mxu1 %vm265_vm10, %v909_v38 }
  0x2c   : > { %p915_p0 = pneg (%p222_p11), %p914_p13  ;;  %p921_p3 = por (%p222_p11), %p920_p2, %p919_p1 }
  0x2e   : > { %p922_p4 = pnand (%p222_p11), %p921_p3, %p915_p0 }
  0x32   : >> { %815 = vmatmul.mubr.msk.bf16.gmra.mxu0 %vm265_vm10, %v910_v39  ;;  %825 = vmatmul.mubr.msk.bf16.gmra.mxu1 %vm265_vm10, %v911_v40 }
  0x33   : >> { %836 = vmatprep.mubr.msk.bf16.mxu0 %vm487_vm11, %v200_v20  ;;  %848 = vmatprep.mubr.msk.bf16.mxu1 %vm487_vm11, %v218_v26 }
  0xea   : >> { %v812_v41 = vpop.f32.mrf.mxu0  ;;  %v822_v42 = vpop.f32.mrf.mxu1 }
  0xeb   : >> { %v328_v59 = vadd.f32 %v812_v41, %v1060_v0  ;;  %v445_v10 = vadd.f32 %v822_v42, %v1060_v0 }
  0xec   : >> { %v319_v43 = vpop.f32.mrf.mxu0  ;;  %v436_v44 = vpop.f32.mrf.mxu1 }
  0xed   : >> { %v352_v32 = vmax.f32 %v328_v59, 0.0  ;;  %v469_v35 = vmax.f32 %v445_v10, 0.0  ;;  %v320_v36 = vadd.f32 %v1060_v0, %v319_v43  ;;  %v437_v37 = vadd.f32 %v1060_v0, %v436_v44 }
  0xee   : >> { %v813_v45 = vpop.f32.mrf.mxu0  ;;  %v823_v46 = vpop.f32.mrf.mxu1 }
  0xef   : >> { %v331_v60 = vadd.f32 %v813_v45, %v1060_v0  ;;  %v448_v61 = vadd.f32 %v823_v46, %v1060_v0  ;;  %v477_v45 = vmax.f32 %v352_v32, %v469_v35  ;;  %v350_v46 = vmax.f32 %v320_v36, 0.0 }
  0xf0   : >> { %v322_v47 = vpop.f32.mrf.mxu0  ;;  %v439_v48 = vpop.f32.mrf.mxu1 }
  0xf1   : >> { %v353_v12 = vmax.f32 %v331_v60, 0.0  ;;  %v323_v14 = vadd.f32 %v1060_v0, %v322_v47  ;;  %v470_v28 = vmax.f32 %v448_v61, 0.0  ;;  %v440_v29 = vadd.f32 %v1060_v0, %v439_v48 }
  0xf2   : >> { %v816_v49 = vpop.f32.mrf.mxu0  ;;  %v826_v50 = vpop.f32.mrf.mxu1  ;;  %v467_v47 = vmax.f32 %v437_v37, 0.0 }
  0xf3   : >> { %v344_v51 = vadd.f32 %v816_v49, %v1060_v0  ;;  %v461_v52 = vadd.f32 %v826_v50, %v1060_v0  ;;  %v478_v40 = vmax.f32 %v353_v12, %v470_v28  ;;  %v351_v41 = vmax.f32 %v323_v14, 0.0 }
  0xf4   : >> { %v335_v53 = vpop.f32.mrf.mxu0  ;;  %v452_v54 = vpop.f32.mrf.mxu1  ;;  %v468_v42 = vmax.f32 %v440_v29, 0.0  ;;  %v475_v43 = vmax.f32 %v350_v46, %v467_v47 }
  0xf5   : >> { %v336_v55 = vadd.f32 %v1060_v0, %v335_v53  ;;  %v453_v56 = vadd.f32 %v1060_v0, %v452_v54  ;;  %v356_v63 = vmax.f32 %v344_v51, 0.0  ;;  %v473_v1 = vmax.f32 %v461_v52, 0.0 }
  0xf6   : >> { %v817_v57 = vpop.f32.mrf.mxu0  ;;  %v827_v58 = vpop.f32.mrf.mxu1  ;;  %v484_v48 = vpack.c.bf16 %v478_v40, %v477_v45  ;;  %v476_v49 = vmax.f32 %v351_v41, %v468_v42 }
  0xf7   : >> { %v347_v62 = vadd.f32 %v817_v57, %v1060_v0  ;;  %v354_v2 = vmax.f32 %v336_v55, 0.0  ;;  %v464_v3 = vadd.f32 %v827_v58, %v1060_v0  ;;  %v471_v6 = vmax.f32 %v453_v56, 0.0 }
  0xf8   : >> { %v338_v4 = vpop.f32.mrf.mxu0  ;;  %v455_v5 = vpop.f32.mrf.mxu1  ;;  %v481_v30 = vmax.f32 %v356_v63, %v473_v1  ;;  %v483_v44 = vpack.c.bf16 %v476_v49, %v475_v43 }
  0xf9   : >> { %v357_v7 = vmax.f32 %v347_v62, 0.0  ;;  %v339_v8 = vadd.f32 %v1060_v0, %v338_v4  ;;  %v456_v9 = vadd.f32 %v1060_v0, %v455_v5  ;;  %v474_v11 = vmax.f32 %v464_v3, 0.0 }
  0xfa   : >> { %v479_v33 = vmax.f32 %v354_v2, %v471_v6 }
  0xfb   : >> { %v355_v15 = vmax.f32 %v339_v8, 0.0  ;;  %v472_v18 = vmax.f32 %v456_v9, 0.0  ;;  %v482_v31 = vmax.f32 %v357_v7, %v474_v11 }
  0xfd   : >> { %v480_v34 = vmax.f32 %v355_v15, %v472_v18  ;;  %v486_v38 = vpack.c.bf16 %v482_v31, %v481_v30 }
  0xff   : >> { %v485_v39 = vpack.c.bf16 %v480_v34, %v479_v33  ;;  %828 = vmatprep.subr.bf16.mxu0 %v486_v38  ;;  %840 = vmatprep.subr.bf16.mxu1 %v486_v38 }
 0x100   : >> { %829 = vmatpush3.bf16.msra.mxu0 %v486_v38  ;;  %841 = vmatpush3.bf16.msra.mxu1 %v486_v38 }
 0x101   : >> { %830 = vmatprep.subr.bf16.mxu0 %v485_v39  ;;  %842 = vmatprep.subr.bf16.mxu1 %v485_v39 }
 0x104   : >> { %831 = vmatpush3.bf16.msra.mxu0 %v485_v39  ;;  %843 = vmatpush3.bf16.msra.mxu1 %v485_v39 }
 0x105   : >> { %832 = vmatprep.subr.bf16.mxu0 %v484_v48  ;;  %844 = vmatprep.subr.bf16.mxu1 %v484_v48 }
 0x108   : >> { %833 = vmatpush3.bf16.msra.mxu0 %v484_v48  ;;  %845 = vmatpush3.bf16.msra.mxu1 %v484_v48 }
 0x109   : >> { %834 = vmatprep.subr.bf16.mxu0 %v483_v44  ;;  %846 = vmatprep.subr.bf16.mxu1 %v483_v44 }
 0x10c   : >> { %835 = vmatpush3.bf16.msra.mxu0 %v483_v44  ;;  %847 = vmatpush3.bf16.msra.mxu1 %v483_v44 }
 0x10f   : >> { %837 = vmatmul.mubr.msk.bf16.vlgmr.msra.gmra.mxu0 %vm487_vm11, %v201_v21  ;;  %849 = vmatmul.mubr.msk.bf16.vlgmr.msra.gmra.mxu1 %vm487_vm11, %v219_v27 }
 0x1cf   : >> { %v838_v50 = vpop.f32.mrf.mxu0  ;;  %v850_v51 = vpop.f32.mrf.mxu1 }
 0x1d0   : >> { %v600_v52 = vmax.f32 %v838_v50, %v850_v51 }
 0x1d1   : >> { %v528_v53 = vpop.f32.mrf.mxu0  ;;  %v583_v54 = vpop.f32.mrf.mxu1 }
 0x1d2   : >> { %v782_v55 = vpack.c.bf16 %v600_v52, %v600_v52  ;;  %v598_v56 = vmax.f32 %v528_v53, %v583_v54 }
 0x1d3   : >> { %v839_v57 = vpop.f32.mrf.mxu0  ;;  %v851_v58 = vpop.f32.mrf.mxu1 }
 0x1d4   : >> { %624 = vst.msk [vmem:[%s620_s19 + $0x8] sm:$0xf] %vm621_vm12, %v782_v55  ;;  %v780_v59 = vpack.c.bf16 %v598_v56, %v598_v56  ;;  %v601_v60 = vmax.f32 %v839_v57, %v851_v58 }
 0x1d5   : >> { %v531_v61 = vpop.f32.mrf.mxu0  ;;  %v586_v62 = vpop.f32.mrf.mxu1 }
 0x1d6   : >> { %622 = vst.msk [vmem:[%s620_s19] sm:$0xf] %vm621_vm12, %v780_v59  ;;  %v783_v63 = vpack.c.bf16 %v601_v60, %v601_v60  ;;  %v599_v1 = vmax.f32 %v531_v61, %v586_v62  ;;  %224 = sbr.rel (!%p222_p11) target bundleno = 33 (0x21), region = 77 }
 0x1d8   : >> { %625 = vst.msk [vmem:[%s620_s19 + $0xc] sm:$0xf] %vm621_vm12, %v783_v63  ;;  %v781_v2 = vpack.c.bf16 %v599_v1, %v599_v1 }
 0x1da   : >> { %623 = vst.msk [vmem:[%s620_s19 + $0x4] sm:$0xf] %vm621_vm12, %v781_v2 }
 0x1db   : > { %925 = shalt.err (!%p922_p4)
}
 0x1dc   : > { %s926_s24 = scalar_lea.hbm %s1161_s28, 8192  ;;  %s930_s8 = scalar_lea.hbm %s1212_s3, 16384 }
 0x1dd   : > { %p927_p7 = scmp.ne.s32.totalorder %s1161_s28, %s926_s24  ;;  %p931_p10 = scmp.lt.s32.totalorder %s1161_s28, %s1212_s3 }
 0x1de   : > { %p932_p11 = scmp.lt.s32.totalorder %s930_s8, %s926_s24 }
 0x1df   : > { %p928_p8 = pnand %p927_p7, %p1045_p5 }
 0x1e0   : > { %p933_p12 = por %p932_p11, %p931_p10 }
 0x1e1   : > { %p929_p9 = pneg %p928_p8 }
 0x1e3   : > { %p934_p13 = pnand %p933_p12, %p929_p9 }
 0x1e5   : > { %937 = shalt.err (!%p934_p13)
}
 0x1e6   : > { %s985_s11 = smov 64   ;;  %s986_s17 = smov 4  }
 0x1e7   : > { %852 = dma.vmem_to_hbm [thread:$0]  (%p1045_p5), %s1165_s29, 8192, %s1161_s28, %s1169_s30, %s985_s11, %s985_s11, %s986_s17  }
 0x1e8 PF: > { %p858_p0 = scmp.ge.s32.totalorder %s976_s15, 2  ;;  %s655_s19 = sand.u32 1, %s964_s12  }
 0x1e9   : > { %s656_s20 = scalar_lea.sflag [#allocation3], %s655_s19 }
 0x1ea   : > { %p855_p1 = pnand %p858_p0, %p1049_p6 }
 0x1ec   : > { %p856_p2 = pneg %p855_p1 }
 0x1ee   : > { %959 = dma.done.wait (%p856_p2), %s656_s20, 8192  }
 0x1ef   : > { %961 = vsyncadd (%p856_p2), %s656_s20, 4294959104  ;;  %p13_p3 = scmp.ge.s32.totalorder %s1032_s18, 4   ;;  %s1215_s12 = smov %s968_s13 }
 0x1f0   : > { %s1216_s13 = smov %s972_s14  ;;  %s1217_s14 = smov %s1043_s21 }
 0x1f1   : > { %s1218_s15 = smov %s1032_s18  ;;  %15 = sbr.rel (!%p13_p3) target bundleno = 3 (0x3), region = 88 }
 0x1f6   :  { %661 = vsyncpa [#allocation3], 1 }
 0x1f7   :  { %663 = vsyncpa [#allocation3 + $0x1], 1 }

</bundles_post_ra>
